<compile_context>
chip_gen: v7x
topology: tpu7x:2x2x1
jax: 0.10.0
libtpu: 0.0.40
codegen_flags: <defaults>
</compile_context>

<pallas_src>
import functools

import jax
import jax.numpy as jnp
from jax import lax
from jax.experimental import pallas as pl
from jax.experimental.pallas import tpu as pltpu


def _node_task_head_kernel(
    q_ref,      # (HB, TQ, d)  compute_dtype   (scaling already folded into Wq)
    k_ref,      # (HB, N,  d)  compute_dtype
    bias_ref,   # (HB, TQ, N)  compute_dtype
    vw_ref,     # (HB, 3,  N)  float32         per-head force-projected V
    dpos_ref,   # (3,  TQ, N)  compute_dtype   (pre-masked when drop_or_add)
    out_ref,    # (3,  TQ)     float32         lane-dense output block
    acc_ref,    # (3,  TQ, N)  float32         VMEM accumulator scratch
    *,
    heads_per_block: int,
):
    hb = pl.program_id(2)

    @pl.when(hb == 0)
    def _():
        acc_ref[...] = jnp.zeros_like(acc_ref)

    for h in range(heads_per_block):
        qh = q_ref[h]                                   # (TQ, d)
        kh = k_ref[h]                                   # (N,  d)

        # QK^T contracting the last dims directly (no transpose materialized).
        attn = lax.dot_general(qh, kh, (((1,), (1,)), ((), ())),
                               preferred_element_type=jnp.float32)   # (TQ, N)
        attn = attn + bias_ref[h].astype(jnp.float32)

        # Numerically-stable softmax over the last axis (eval mode: no dropout).
        attn = attn - jnp.max(attn, axis=-1, keepdims=True)
        ex = jnp.exp(attn)                              # EUP
        denom = jnp.sum(ex, axis=-1, keepdims=True)     # (TQ, 1)
        inv = pl.reciprocal(denom, approx=True)         # EUP reciprocal
        inv = inv * (2.0 - denom * inv)                 # one Newton step
        p = ex * inv                                    # (TQ, N)

        vw = vw_ref[h]                                  # (3, N) f32
        for c in range(3):
            # sublane-broadcast row of vw; VPU accumulate into VMEM scratch
            acc_ref[c] += p * vw[c:c + 1, :]

    @pl.when(hb == pl.num_programs(2) - 1)
    def _():
        dpos = dpos_ref[...].astype(jnp.float32)        # (3, TQ, N)
        # f[c, i] = sum_j dpos[c, i, j] * acc[c, i, j]  (one lane reduce / coord)
        out_ref[...] = jnp.sum(acc_ref[...] * dpos, axis=-1)


def prepare_node_task_head_params(params, num_heads):
    """One-time weight rearrangement (hoisted out of the forward path)."""
    embed_dim = params["wq"].shape[0]
    head_dim = embed_dim // num_heads
    scaling = head_dim ** (-0.5)
    wf = jnp.stack([params["wf1"][0], params["wf2"][0], params["wf3"][0]],
                   axis=-1)                                          # (E, 3)
    return {
        "wq_t": (params["wq"] * scaling).T.astype(jnp.float32),      # (E, E) in,out
        "bq": (params["bq"] * scaling).astype(jnp.float32),
        "wk_t": params["wk"].T.astype(jnp.float32),
        "bk": params["bk"].astype(jnp.float32),
        "wv_t": params["wv"].T.astype(jnp.float32),
        "bv": params["bv"].astype(jnp.float32),
        "wf_hdc": wf.reshape(num_heads, head_dim, 3).astype(jnp.float32),
        "bf": jnp.concatenate(
            [params["bf1"], params["bf2"], params["bf3"]]).astype(jnp.float32),
    }


def _largest_divisor_le(x, cap):
    d = min(x, cap)
    while x % d:
        d -= 1
    return d


def node_task_head_forward(query, attn_bias, delta_pos, drop_edge_mask,
                           drop_or_add, prepared, num_heads,
                           compute_dtype=jnp.float32,
                           head_block_size=None, row_block_size=None):
    bsz, n, embed_dim = query.shape
    assert embed_dim % num_heads == 0
    head_dim = embed_dim // num_heads
    assert attn_bias.shape == (bsz * num_heads, n, n)
    assert delta_pos.shape == (bsz, n, n, 3)
    assert drop_edge_mask.shape == (n, n)

    x = query.astype(jnp.float32)
    # QKV projections as plain XLA GEMMs; scaling is already folded into wq/bq.
    q = (x @ prepared["wq_t"] + prepared["bq"]).reshape(bsz, n, num_heads, head_dim)
    k = (x @ prepared["wk_t"] + prepared["bk"]).reshape(bsz, n, num_heads, head_dim)
    v = (x @ prepared["wv_t"] + prepared["bv"]).reshape(bsz, n, num_heads, head_dim)
    q = jnp.transpose(q, (0, 2, 1, 3)).astype(compute_dtype)         # (B,H,N,d)
    k = jnp.transpose(k, (0, 2, 1, 3)).astype(compute_dtype)         # (B,H,N,d)
    # Per-head force-projection of V, fused in the wrapper (tiny tensor).
    vw = jnp.einsum("bjhd,hdc->bhcj", v, prepared["wf_hdc"]
                    ).astype(jnp.float32)                             # (B,H,3,N)

    bias = attn_bias.reshape(bsz, num_heads, n, n).astype(compute_dtype)

    dpos = jnp.transpose(delta_pos, (0, 3, 1, 2)).astype(jnp.float32)  # (B,3,N,N)
    if drop_or_add:
        keep = 1.0 - drop_edge_mask.astype(jnp.float32)
        dpos = dpos * keep[None, None]
    # else: torch overwrites x with the unmasked product, so no mask is applied.
    dpos = dpos.astype(compute_dtype)

    # ---- block-size selection --------------------------------------------
    if row_block_size is None:
        row_block_size = 128 if (n > 128 and n % 128 == 0) else n
    tq = row_block_size
    assert n % tq == 0 and (tq == n or tq % 128 == 0), "bad row_block_size"

    itm = jnp.dtype(compute_dtype).itemsize
    if head_block_size is None:
        budget = 4 * 2 ** 20                       # cap the bias block ~4 MiB
        hb = _largest_divisor_le(num_heads, 8)
        while hb > 1 and hb * tq * n * itm > budget:
            nxt = hb - 1
            while num_heads % nxt:
                nxt -= 1
            hb = nxt
        head_block_size = hb
    hbs = head_block_size
    assert num_heads % hbs == 0, "head_block_size must divide num_heads"

    grid = (bsz, n // tq, num_heads // hbs)

    # VMEM budget: double-buffered blocks + accumulator scratch (with headroom).
    est = 2 * (hbs * tq * head_dim * itm          # q
               + hbs * n * head_dim * itm         # k
               + hbs * tq * n * itm               # bias
               + hbs * 3 * n * 4                  # vw
               + 3 * tq * n * itm                 # dpos
               + 3 * tq * 4)                      # out
    est += 3 * tq * n * 4                         # acc scratch
    vmem_limit = int(min(max(2 * est, 16 * 2 ** 20), 48 * 2 ** 20))

    kernel = functools.partial(_node_task_head_kernel, heads_per_block=hbs)

    out = pl.pallas_call(
        kernel,
        out_shape=jax.ShapeDtypeStruct((bsz, 3, n), jnp.float32),
        grid=grid,
        in_specs=[
            pl.BlockSpec((None, hbs, tq, head_dim), lambda b, r, h: (b, h, r, 0)),  # q
            pl.BlockSpec((None, hbs, n, head_dim), lambda b, r, h: (b, h, 0, 0)),   # k
            pl.BlockSpec((None, hbs, tq, n), lambda b, r, h: (b, h, r, 0)),         # bias
            pl.BlockSpec((None, hbs, 3, n), lambda b, r, h: (b, h, 0, 0)),          # vw
            pl.BlockSpec((None, 3, tq, n), lambda b, r, h: (b, 0, r, 0)),           # dpos
        ],
        out_specs=pl.BlockSpec((None, 3, tq), lambda b, r, h: (b, 0, r)),
        scratch_shapes=[pltpu.VMEM((3, tq, n), jnp.float32)],
        compiler_params=pltpu.CompilerParams(
            dimension_semantics=("parallel", "parallel", "arbitrary"),
            vmem_limit_bytes=vmem_limit,
        ),
    )(q, k, bias, vw, dpos)

    # Lane-dense (B,3,N) kernel output -> (B,N,3), plus force-proj biases.
    return jnp.transpose(out, (0, 2, 1)) + prepared["bf"][None, None, :]


def ref_forward(query, attn_bias, delta_pos, drop_edge_mask, drop_or_add,
                params, num_heads):
    """Pure-JAX reference (eval mode) mirroring the PyTorch forward."""
    bsz, n, embed_dim = query.shape
    d = embed_dim // num_heads
    scaling = d ** (-0.5)

    def lin(x, w, b):
        return x @ w.T + b

    q = lin(query, params["wq"], params["bq"]).reshape(
        bsz, n, num_heads, d).transpose(0, 2, 1, 3) * scaling
    k = lin(query, params["wk"], params["bk"]).reshape(
        bsz, n, num_heads, d).transpose(0, 2, 1, 3)
    v = lin(query, params["wv"], params["bv"]).reshape(
        bsz, n, num_heads, d).transpose(0, 2, 1, 3)

    attn = jnp.einsum("bhqd,bhkd->bhqk", q, k)
    attn = attn.reshape(bsz * num_heads, n, n) + attn_bias
    probs = jax.nn.softmax(attn, axis=-1).reshape(bsz, num_heads, n, n)

    rot = probs[..., None] * delta_pos[:, None, :, :, :]   # (B,H,N,N,3)
    rot = rot.transpose(0, 1, 4, 2, 3)                     # (B,H,3,N,N)
    if drop_or_add:
        rot = jnp.where(drop_edge_mask[None, None, None, :, :], 0.0, rot)
    # else-branch: torch code overwrites x with the unmasked product anyway.

    x = jnp.einsum("bhcij,bhjd->bhcid", rot, v)            # (B,H,3,N,d)
    x = x.transpose(0, 3, 2, 1, 4).reshape(bsz, n, 3, embed_dim)

    f1 = x[:, :, 0, :] @ params["wf1"].T + params["bf1"]
    f2 = x[:, :, 1, :] @ params["wf2"].T + params["bf2"]
    f3 = x[:, :, 2, :] @ params["wf3"].T + params["bf3"]
    return jnp.concatenate([f1, f2, f3], axis=-1).astype(jnp.float32)


if __name__ == "__main__":
    bsz, n_node, embed_dim, num_heads = 2, 8, 32, 4

    key = jax.random.PRNGKey(0)
    keys = jax.random.split(key, 16)

    params = {
        "wq": 0.1 * jax.random.normal(keys[0], (embed_dim, embed_dim), jnp.float32),
        "bq": 0.1 * jax.random.normal(keys[1], (embed_dim,), jnp.float32),
        "wk": 0.1 * jax.random.normal(keys[2], (embed_dim, embed_dim), jnp.float32),
        "bk": 0.1 * jax.random.normal(keys[3], (embed_dim,), jnp.float32),
        "wv": 0.1 * jax.random.normal(keys[4], (embed_dim, embed_dim), jnp.float32),
        "bv": 0.1 * jax.random.normal(keys[5], (embed_dim,), jnp.float32),
        "wf1": 0.1 * jax.random.normal(keys[6], (1, embed_dim), jnp.float32),
        "bf1": 0.1 * jax.random.normal(keys[7], (1,), jnp.float32),
        "wf2": 0.1 * jax.random.normal(keys[8], (1, embed_dim), jnp.float32),
        "bf2": 0.1 * jax.random.normal(keys[9], (1,), jnp.float32),
        "wf3": 0.1 * jax.random.normal(keys[10], (1, embed_dim), jnp.float32),
        "bf3": 0.1 * jax.random.normal(keys[11], (1,), jnp.float32),
    }
    prepared = prepare_node_task_head_params(params, num_heads)

    query = jax.random.normal(keys[12], (bsz, n_node, embed_dim), jnp.float32)
    attn_bias = 0.5 * jax.random.normal(
        keys[13], (bsz * num_heads, n_node, n_node), jnp.float32)
    delta_pos = jax.random.normal(keys[14], (bsz, n_node, n_node, 3), jnp.float32)
    drop_edge_mask = jax.random.bernoulli(keys[15], 0.3, (n_node, n_node))

    ok = True

    # f32 path: default head-blocking and an explicit multi-head-block grid
    # (exercises the @pl.when accumulator across the reduction axis).
    for drop_or_add in (True, False):
        for hbs in (None, 2, 1):
            out = node_task_head_forward(
                query, attn_bias, delta_pos, drop_edge_mask, drop_or_add,
                prepared, num_heads, head_block_size=hbs)
            out = jax.block_until_ready(out)
            ref = ref_forward(
                query, attn_bias, delta_pos, drop_edge_mask, drop_or_add,
                params, num_heads)
            err = float(jnp.max(jnp.abs(out - ref)))
            if not (out.shape == (bsz, n_node, 3) and err < 5e-4):
                ok = False
                print(f"mismatch (f32) drop_or_add={drop_or_add} "
                      f"head_block={hbs}: max abs err {err}")

    # bf16 transport path (bias / dpos / q / k halved HBM stream); f32 math
    # inside the kernel keeps the error small.
    out_bf = node_task_head_forward(
        query, attn_bias, delta_pos, drop_edge_mask, True,
        prepared, num_heads, compute_dtype=jnp.bfloat16)
    out_bf = jax.block_until_ready(out_bf)
    ref_bf = ref_forward(
        query, attn_bias, delta_pos, drop_edge_mask, True, params, num_heads)
    err_bf = float(jnp.max(jnp.abs(out_bf - ref_bf)))
    if not (out_bf.shape == (bsz, n_node, 3) and err_bf < 5e-2):
        ok = False
        print(f"mismatch (bf16) drop_or_add=True: max abs err {err_bf}")

    if ok:
        print("KERNEL_OK")
</pallas_src>

<mosaic_0001>
module attributes {stable_mosaic.version = 11 : i64} {
  func.func @_node_task_head_kernel(%arg0: i32, %arg1: i32, %arg2: i32, %arg3: memref<1x4x8x8xf32, #tpu.memory_space<vmem>>, %arg4: memref<1x4x8x8xf32, #tpu.memory_space<vmem>>, %arg5: memref<1x4x8x8xf32, #tpu.memory_space<vmem>>, %arg6: memref<1x4x3x8xf32, #tpu.memory_space<vmem>>, %arg7: memref<1x3x8x8xf32, #tpu.memory_space<vmem>>, %arg8: memref<1x3x8xf32, #tpu.memory_space<vmem>>, %arg9: memref<3x8x8xf32, #tpu.memory_space<vmem>>) attributes {dimension_semantics = [#tpu.dimension_semantics<parallel>, #tpu.dimension_semantics<parallel>, #tpu.dimension_semantics<arbitrary>], iteration_bounds = array<i64: 2, 1, 1>, scalar_prefetch = 0 : i64, scratch_operands = 1 : i64, tpu.core_type = #tpu.core_type<tc>, window_params = [{transform_indices = @transform_0, window_bounds = array<i64: 1, 4, 8, 8>}, {transform_indices = @transform_1, window_bounds = array<i64: 1, 4, 8, 8>}, {transform_indices = @transform_2, window_bounds = array<i64: 1, 4, 8, 8>}, {transform_indices = @transform_3, window_bounds = array<i64: 1, 4, 3, 8>}, {transform_indices = @transform_4, window_bounds = array<i64: 1, 3, 8, 8>}, {transform_indices = @transform_5, window_bounds = array<i64: 1, 3, 8>}]} {
    %c0_i32 = arith.constant 0 : i32
    %0 = arith.cmpi eq, %arg2, %c0_i32 : i32
    %1 = arith.extui %0 : i1 to i32
    %c0_i32_0 = arith.constant 0 : i32
    %2 = arith.cmpi ne, %1, %c0_i32_0 : i32
    scf.if %2 {
      %cst_150 = arith.constant 0.000000e+00 : f32
      %210 = vector.broadcast %cst_150 : f32 to vector<3x8x8xf32>
      %c0_151 = arith.constant 0 : index
      %c0_152 = arith.constant 0 : index
      %c0_153 = arith.constant 0 : index
      %211 = vector.load %arg9[%c0_151, %c0_152, %c0_153] : memref<3x8x8xf32, #tpu.memory_space<vmem>>, vector<3x8x8xf32>
      tpu.vector_store %arg9[%c0_151, %c0_152, %c0_153], %210 {strides = array<i32>} : memref<3x8x8xf32, #tpu.memory_space<vmem>>, vector<3x8x8xf32>,
    } else {
    }
    %c0 = arith.constant 0 : index
    %c0_1 = arith.constant 0 : index
    %c0_2 = arith.constant 0 : index
    %c0_3 = arith.constant 0 : index
    %3 = vector.load %arg3[%c0, %c0_1, %c0_2, %c0_3] : memref<1x4x8x8xf32, #tpu.memory_space<vmem>>, vector<1x1x8x8xf32>
    %4 = vector.shape_cast %3 : vector<1x1x8x8xf32> to vector<8x8xf32>
    %c0_4 = arith.constant 0 : index
    %c0_5 = arith.constant 0 : index
    %c0_6 = arith.constant 0 : index
    %c0_7 = arith.constant 0 : index
    %5 = vector.load %arg4[%c0_4, %c0_5, %c0_6, %c0_7] : memref<1x4x8x8xf32, #tpu.memory_space<vmem>>, vector<1x1x8x8xf32>
    %6 = vector.shape_cast %5 : vector<1x1x8x8xf32> to vector<8x8xf32>
    %cst = arith.constant dense<0.000000e+00> : vector<8x8xf32>
    %7 = tpu.matmul %4, %6, %cst {dimension_numbers = #tpu.dot_dimension_numbers<[1], [1], [0], [0], [0, 0, 1, 0], [], []>} : vector<8x8xf32>, vector<8x8xf32>, vector<8x8xf32> -> vector<8x8xf32>
    %c0_8 = arith.constant 0 : index
    %c0_9 = arith.constant 0 : index
    %c0_10 = arith.constant 0 : index
    %c0_11 = arith.constant 0 : index
    %8 = vector.load %arg5[%c0_8, %c0_9, %c0_10, %c0_11] : memref<1x4x8x8xf32, #tpu.memory_space<vmem>>, vector<1x1x8x8xf32>
    %9 = vector.shape_cast %8 : vector<1x1x8x8xf32> to vector<8x8xf32>
    %10 = arith.addf %7, %9 : vector<8x8xf32>
    %cst_12 = arith.constant dense<0xFF800000> : vector<8xf32>
    %11 = vector.multi_reduction <maximumf>, %10, %cst_12 [1] : vector<8x8xf32> to vector<8xf32>
    %12 = vector.shape_cast %11 : vector<8xf32> to vector<8x1xf32>
    %13 = vector.broadcast %12 : vector<8x1xf32> to vector<8x8xf32>
    %14 = arith.subf %10, %13 : vector<8x8xf32>
    %15 = math.exp %14 : vector<8x8xf32>
    %cst_13 = arith.constant dense<0.000000e+00> : vector<8xf32>
    %16 = vector.multi_reduction <add>, %15, %cst_13 [1] : vector<8x8xf32> to vector<8xf32>
    %17 = vector.shape_cast %16 : vector<8xf32> to vector<8x1xf32>
    %18 = tpu.reciprocal %17 {approx = true} : vector<8x1xf32> -> vector<8x1xf32>
    %19 = arith.mulf %17, %18 : vector<8x1xf32>
    %cst_14 = arith.constant 2.000000e+00 : f32
    %20 = vector.broadcast %cst_14 : f32 to vector<8x1xf32>
    %21 = arith.subf %20, %19 : vector<8x1xf32>
    %22 = arith.mulf %18, %21 : vector<8x1xf32>
    %23 = vector.broadcast %22 : vector<8x1xf32> to vector<8x8xf32>
    %24 = arith.mulf %15, %23 : vector<8x8xf32>
    %c0_15 = arith.constant 0 : index
    %c0_16 = arith.constant 0 : index
    %c0_17 = arith.constant 0 : index
    %c0_18 = arith.constant 0 : index
    %25 = vector.load %arg6[%c0_15, %c0_16, %c0_17, %c0_18] : memref<1x4x3x8xf32, #tpu.memory_space<vmem>>, vector<1x1x3x8xf32>
    %26 = vector.shape_cast %25 : vector<1x1x3x8xf32> to vector<3x8xf32>
    %c0_19 = arith.constant 0 : index
    %c0_20 = arith.constant 0 : index
    %c0_21 = arith.constant 0 : index
    %27 = vector.load %arg9[%c0_19, %c0_20, %c0_21] : memref<3x8x8xf32, #tpu.memory_space<vmem>>, vector<1x8x8xf32>
    %28 = vector.shape_cast %27 : vector<1x8x8xf32> to vector<8x8xf32>
    %29 = vector.extract_strided_slice %26 {offsets = [0, 0], sizes = [1, 8], strides = [1, 1]} : vector<3x8xf32> to vector<1x8xf32>
    %30 = vector.broadcast %29 : vector<1x8xf32> to vector<8x8xf32>
    %31 = arith.mulf %24, %30 : vector<8x8xf32>
    %32 = arith.addf %28, %31 : vector<8x8xf32>
    %c0_22 = arith.constant 0 : index
    %c0_23 = arith.constant 0 : index
    %c0_24 = arith.constant 0 : index
    %33 = vector.load %arg9[%c0_22, %c0_23, %c0_24] : memref<3x8x8xf32, #tpu.memory_space<vmem>>, vector<1x8x8xf32>
    %34 = vector.shape_cast %33 : vector<1x8x8xf32> to vector<8x8xf32>
    %35 = vector.shape_cast %32 : vector<8x8xf32> to vector<1x8x8xf32>
    tpu.vector_store %arg9[%c0_22, %c0_23, %c0_24], %35 {strides = array<i32>} : memref<3x8x8xf32, #tpu.memory_space<vmem>>, vector<1x8x8xf32>,
    %c1 = arith.constant 1 : index
    %c0_25 = arith.constant 0 : index
    %c0_26 = arith.constant 0 : index
    %36 = vector.load %arg9[%c1, %c0_25, %c0_26] : memref<3x8x8xf32, #tpu.memory_space<vmem>>, vector<1x8x8xf32>
    %37 = vector.shape_cast %36 : vector<1x8x8xf32> to vector<8x8xf32>
    %38 = vector.extract_strided_slice %26 {offsets = [1, 0], sizes = [1, 8], strides = [1, 1]} : vector<3x8xf32> to vector<1x8xf32>
    %39 = vector.broadcast %38 : vector<1x8xf32> to vector<8x8xf32>
    %40 = arith.mulf %24, %39 : vector<8x8xf32>
    %41 = arith.addf %37, %40 : vector<8x8xf32>
    %c1_27 = arith.constant 1 : index
    %c0_28 = arith.constant 0 : index
    %c0_29 = arith.constant 0 : index
    %42 = vector.load %arg9[%c1_27, %c0_28, %c0_29] : memref<3x8x8xf32, #tpu.memory_space<vmem>>, vector<1x8x8xf32>
    %43 = vector.shape_cast %42 : vector<1x8x8xf32> to vector<8x8xf32>
    %44 = vector.shape_cast %41 : vector<8x8xf32> to vector<1x8x8xf32>
    tpu.vector_store %arg9[%c1_27, %c0_28, %c0_29], %44 {strides = array<i32>} : memref<3x8x8xf32, #tpu.memory_space<vmem>>, vector<1x8x8xf32>,
    %c2 = arith.constant 2 : index
    %c0_30 = arith.constant 0 : index
    %c0_31 = arith.constant 0 : index
    %45 = vector.load %arg9[%c2, %c0_30, %c0_31] : memref<3x8x8xf32, #tpu.memory_space<vmem>>, vector<1x8x8xf32>
    %46 = vector.shape_cast %45 : vector<1x8x8xf32> to vector<8x8xf32>
    %47 = vector.extract_strided_slice %26 {offsets = [2, 0], sizes = [1, 8], strides = [1, 1]} : vector<3x8xf32> to vector<1x8xf32>
    %48 = vector.broadcast %47 : vector<1x8xf32> to vector<8x8xf32>
    %49 = arith.mulf %24, %48 : vector<8x8xf32>
    %50 = arith.addf %46, %49 : vector<8x8xf32>
    %c2_32 = arith.constant 2 : index
    %c0_33 = arith.constant 0 : index
    %c0_34 = arith.constant 0 : index
    %51 = vector.load %arg9[%c2_32, %c0_33, %c0_34] : memref<3x8x8xf32, #tpu.memory_space<vmem>>, vector<1x8x8xf32>
    %52 = vector.shape_cast %51 : vector<1x8x8xf32> to vector<8x8xf32>
    %53 = vector.shape_cast %50 : vector<8x8xf32> to vector<1x8x8xf32>
    tpu.vector_store %arg9[%c2_32, %c0_33, %c0_34], %53 {strides = array<i32>} : memref<3x8x8xf32, #tpu.memory_space<vmem>>, vector<1x8x8xf32>,
    %c0_35 = arith.constant 0 : index
    %c1_36 = arith.constant 1 : index
    %c0_37 = arith.constant 0 : index
    %c0_38 = arith.constant 0 : index
    %54 = vector.load %arg3[%c0_35, %c1_36, %c0_37, %c0_38] : memref<1x4x8x8xf32, #tpu.memory_space<vmem>>, vector<1x1x8x8xf32>
    %55 = vector.shape_cast %54 : vector<1x1x8x8xf32> to vector<8x8xf32>
    %c0_39 = arith.constant 0 : index
    %c1_40 = arith.constant 1 : index
    %c0_41 = arith.constant 0 : index
    %c0_42 = arith.constant 0 : index
    %56 = vector.load %arg4[%c0_39, %c1_40, %c0_41, %c0_42] : memref<1x4x8x8xf32, #tpu.memory_space<vmem>>, vector<1x1x8x8xf32>
    %57 = vector.shape_cast %56 : vector<1x1x8x8xf32> to vector<8x8xf32>
    %cst_43 = arith.constant dense<0.000000e+00> : vector<8x8xf32>
    %58 = tpu.matmul %55, %57, %cst_43 {dimension_numbers = #tpu.dot_dimension_numbers<[1], [1], [0], [0], [0, 0, 1, 0], [], []>} : vector<8x8xf32>, vector<8x8xf32>, vector<8x8xf32> -> vector<8x8xf32>
    %c0_44 = arith.constant 0 : index
    %c1_45 = arith.constant 1 : index
    %c0_46 = arith.constant 0 : index
    %c0_47 = arith.constant 0 : index
    %59 = vector.load %arg5[%c0_44, %c1_45, %c0_46, %c0_47] : memref<1x4x8x8xf32, #tpu.memory_space<vmem>>, vector<1x1x8x8xf32>
    %60 = vector.shape_cast %59 : vector<1x1x8x8xf32> to vector<8x8xf32>
    %61 = arith.addf %58, %60 : vector<8x8xf32>
    %cst_48 = arith.constant dense<0xFF800000> : vector<8xf32>
    %62 = vector.multi_reduction <maximumf>, %61, %cst_48 [1] : vector<8x8xf32> to vector<8xf32>
    %63 = vector.shape_cast %62 : vector<8xf32> to vector<8x1xf32>
    %64 = vector.broadcast %63 : vector<8x1xf32> to vector<8x8xf32>
    %65 = arith.subf %61, %64 : vector<8x8xf32>
    %66 = math.exp %65 : vector<8x8xf32>
    %cst_49 = arith.constant dense<0.000000e+00> : vector<8xf32>
    %67 = vector.multi_reduction <add>, %66, %cst_49 [1] : vector<8x8xf32> to vector<8xf32>
    %68 = vector.shape_cast %67 : vector<8xf32> to vector<8x1xf32>
    %69 = tpu.reciprocal %68 {approx = true} : vector<8x1xf32> -> vector<8x1xf32>
    %70 = arith.mulf %68, %69 : vector<8x1xf32>
    %cst_50 = arith.constant 2.000000e+00 : f32
    %71 = vector.broadcast %cst_50 : f32 to vector<8x1xf32>
    %72 = arith.subf %71, %70 : vector<8x1xf32>
    %73 = arith.mulf %69, %72 : vector<8x1xf32>
    %74 = vector.broadcast %73 : vector<8x1xf32> to vector<8x8xf32>
    %75 = arith.mulf %66, %74 : vector<8x8xf32>
    %c0_51 = arith.constant 0 : index
    %c1_52 = arith.constant 1 : index
    %c0_53 = arith.constant 0 : index
    %c0_54 = arith.constant 0 : index
    %76 = vector.load %arg6[%c0_51, %c1_52, %c0_53, %c0_54] : memref<1x4x3x8xf32, #tpu.memory_space<vmem>>, vector<1x1x3x8xf32>
    %77 = vector.shape_cast %76 : vector<1x1x3x8xf32> to vector<3x8xf32>
    %c0_55 = arith.constant 0 : index
    %c0_56 = arith.constant 0 : index
    %c0_57 = arith.constant 0 : index
    %78 = vector.load %arg9[%c0_55, %c0_56, %c0_57] : memref<3x8x8xf32, #tpu.memory_space<vmem>>, vector<1x8x8xf32>
    %79 = vector.shape_cast %78 : vector<1x8x8xf32> to vector<8x8xf32>
    %80 = vector.extract_strided_slice %77 {offsets = [0, 0], sizes = [1, 8], strides = [1, 1]} : vector<3x8xf32> to vector<1x8xf32>
    %81 = vector.broadcast %80 : vector<1x8xf32> to vector<8x8xf32>
    %82 = arith.mulf %75, %81 : vector<8x8xf32>
    %83 = arith.addf %79, %82 : vector<8x8xf32>
    %c0_58 = arith.constant 0 : index
    %c0_59 = arith.constant 0 : index
    %c0_60 = arith.constant 0 : index
    %84 = vector.load %arg9[%c0_58, %c0_59, %c0_60] : memref<3x8x8xf32, #tpu.memory_space<vmem>>, vector<1x8x8xf32>
    %85 = vector.shape_cast %84 : vector<1x8x8xf32> to vector<8x8xf32>
    %86 = vector.shape_cast %83 : vector<8x8xf32> to vector<1x8x8xf32>
    tpu.vector_store %arg9[%c0_58, %c0_59, %c0_60], %86 {strides = array<i32>} : memref<3x8x8xf32, #tpu.memory_space<vmem>>, vector<1x8x8xf32>,
    %c1_61 = arith.constant 1 : index
    %c0_62 = arith.constant 0 : index
    %c0_63 = arith.constant 0 : index
    %87 = vector.load %arg9[%c1_61, %c0_62, %c0_63] : memref<3x8x8xf32, #tpu.memory_space<vmem>>, vector<1x8x8xf32>
    %88 = vector.shape_cast %87 : vector<1x8x8xf32> to vector<8x8xf32>
    %89 = vector.extract_strided_slice %77 {offsets = [1, 0], sizes = [1, 8], strides = [1, 1]} : vector<3x8xf32> to vector<1x8xf32>
    %90 = vector.broadcast %89 : vector<1x8xf32> to vector<8x8xf32>
    %91 = arith.mulf %75, %90 : vector<8x8xf32>
    %92 = arith.addf %88, %91 : vector<8x8xf32>
    %c1_64 = arith.constant 1 : index
    %c0_65 = arith.constant 0 : index
    %c0_66 = arith.constant 0 : index
    %93 = vector.load %arg9[%c1_64, %c0_65, %c0_66] : memref<3x8x8xf32, #tpu.memory_space<vmem>>, vector<1x8x8xf32>
    %94 = vector.shape_cast %93 : vector<1x8x8xf32> to vector<8x8xf32>
    %95 = vector.shape_cast %92 : vector<8x8xf32> to vector<1x8x8xf32>
    tpu.vector_store %arg9[%c1_64, %c0_65, %c0_66], %95 {strides = array<i32>} : memref<3x8x8xf32, #tpu.memory_space<vmem>>, vector<1x8x8xf32>,
    %c2_67 = arith.constant 2 : index
    %c0_68 = arith.constant 0 : index
    %c0_69 = arith.constant 0 : index
    %96 = vector.load %arg9[%c2_67, %c0_68, %c0_69] : memref<3x8x8xf32, #tpu.memory_space<vmem>>, vector<1x8x8xf32>
    %97 = vector.shape_cast %96 : vector<1x8x8xf32> to vector<8x8xf32>
    %98 = vector.extract_strided_slice %77 {offsets = [2, 0], sizes = [1, 8], strides = [1, 1]} : vector<3x8xf32> to vector<1x8xf32>
    %99 = vector.broadcast %98 : vector<1x8xf32> to vector<8x8xf32>
    %100 = arith.mulf %75, %99 : vector<8x8xf32>
    %101 = arith.addf %97, %100 : vector<8x8xf32>
    %c2_70 = arith.constant 2 : index
    %c0_71 = arith.constant 0 : index
    %c0_72 = arith.constant 0 : index
    %102 = vector.load %arg9[%c2_70, %c0_71, %c0_72] : memref<3x8x8xf32, #tpu.memory_space<vmem>>, vector<1x8x8xf32>
    %103 = vector.shape_cast %102 : vector<1x8x8xf32> to vector<8x8xf32>
    %104 = vector.shape_cast %101 : vector<8x8xf32> to vector<1x8x8xf32>
    tpu.vector_store %arg9[%c2_70, %c0_71, %c0_72], %104 {strides = array<i32>} : memref<3x8x8xf32, #tpu.memory_space<vmem>>, vector<1x8x8xf32>,
    %c0_73 = arith.constant 0 : index
    %c2_74 = arith.constant 2 : index
    %c0_75 = arith.constant 0 : index
    %c0_76 = arith.constant 0 : index
    %105 = vector.load %arg3[%c0_73, %c2_74, %c0_75, %c0_76] : memref<1x4x8x8xf32, #tpu.memory_space<vmem>>, vector<1x1x8x8xf32>
    %106 = vector.shape_cast %105 : vector<1x1x8x8xf32> to vector<8x8xf32>
    %c0_77 = arith.constant 0 : index
    %c2_78 = arith.constant 2 : index
    %c0_79 = arith.constant 0 : index
    %c0_80 = arith.constant 0 : index
    %107 = vector.load %arg4[%c0_77, %c2_78, %c0_79, %c0_80] : memref<1x4x8x8xf32, #tpu.memory_space<vmem>>, vector<1x1x8x8xf32>
    %108 = vector.shape_cast %107 : vector<1x1x8x8xf32> to vector<8x8xf32>
    %cst_81 = arith.constant dense<0.000000e+00> : vector<8x8xf32>
    %109 = tpu.matmul %106, %108, %cst_81 {dimension_numbers = #tpu.dot_dimension_numbers<[1], [1], [0], [0], [0, 0, 1, 0], [], []>} : vector<8x8xf32>, vector<8x8xf32>, vector<8x8xf32> -> vector<8x8xf32>
    %c0_82 = arith.constant 0 : index
    %c2_83 = arith.constant 2 : index
    %c0_84 = arith.constant 0 : index
    %c0_85 = arith.constant 0 : index
    %110 = vector.load %arg5[%c0_82, %c2_83, %c0_84, %c0_85] : memref<1x4x8x8xf32, #tpu.memory_space<vmem>>, vector<1x1x8x8xf32>
    %111 = vector.shape_cast %110 : vector<1x1x8x8xf32> to vector<8x8xf32>
    %112 = arith.addf %109, %111 : vector<8x8xf32>
    %cst_86 = arith.constant dense<0xFF800000> : vector<8xf32>
    %113 = vector.multi_reduction <maximumf>, %112, %cst_86 [1] : vector<8x8xf32> to vector<8xf32>
    %114 = vector.shape_cast %113 : vector<8xf32> to vector<8x1xf32>
    %115 = vector.broadcast %114 : vector<8x1xf32> to vector<8x8xf32>
    %116 = arith.subf %112, %115 : vector<8x8xf32>
    %117 = math.exp %116 : vector<8x8xf32>
    %cst_87 = arith.constant dense<0.000000e+00> : vector<8xf32>
    %118 = vector.multi_reduction <add>, %117, %cst_87 [1] : vector<8x8xf32> to vector<8xf32>
    %119 = vector.shape_cast %118 : vector<8xf32> to vector<8x1xf32>
    %120 = tpu.reciprocal %119 {approx = true} : vector<8x1xf32> -> vector<8x1xf32>
    %121 = arith.mulf %119, %120 : vector<8x1xf32>
    %cst_88 = arith.constant 2.000000e+00 : f32
    %122 = vector.broadcast %cst_88 : f32 to vector<8x1xf32>
    %123 = arith.subf %122, %121 : vector<8x1xf32>
    %124 = arith.mulf %120, %123 : vector<8x1xf32>
    %125 = vector.broadcast %124 : vector<8x1xf32> to vector<8x8xf32>
    %126 = arith.mulf %117, %125 : vector<8x8xf32>
    %c0_89 = arith.constant 0 : index
    %c2_90 = arith.constant 2 : index
    %c0_91 = arith.constant 0 : index
    %c0_92 = arith.constant 0 : index
    %127 = vector.load %arg6[%c0_89, %c2_90, %c0_91, %c0_92] : memref<1x4x3x8xf32, #tpu.memory_space<vmem>>, vector<1x1x3x8xf32>
    %128 = vector.shape_cast %127 : vector<1x1x3x8xf32> to vector<3x8xf32>
    %c0_93 = arith.constant 0 : index
    %c0_94 = arith.constant 0 : index
    %c0_95 = arith.constant 0 : index
    %129 = vector.load %arg9[%c0_93, %c0_94, %c0_95] : memref<3x8x8xf32, #tpu.memory_space<vmem>>, vector<1x8x8xf32>
    %130 = vector.shape_cast %129 : vector<1x8x8xf32> to vector<8x8xf32>
    %131 = vector.extract_strided_slice %128 {offsets = [0, 0], sizes = [1, 8], strides = [1, 1]} : vector<3x8xf32> to vector<1x8xf32>
    %132 = vector.broadcast %131 : vector<1x8xf32> to vector<8x8xf32>
    %133 = arith.mulf %126, %132 : vector<8x8xf32>
    %134 = arith.addf %130, %133 : vector<8x8xf32>
    %c0_96 = arith.constant 0 : index
    %c0_97 = arith.constant 0 : index
    %c0_98 = arith.constant 0 : index
    %135 = vector.load %arg9[%c0_96, %c0_97, %c0_98] : memref<3x8x8xf32, #tpu.memory_space<vmem>>, vector<1x8x8xf32>
    %136 = vector.shape_cast %135 : vector<1x8x8xf32> to vector<8x8xf32>
    %137 = vector.shape_cast %134 : vector<8x8xf32> to vector<1x8x8xf32>
    tpu.vector_store %arg9[%c0_96, %c0_97, %c0_98], %137 {strides = array<i32>} : memref<3x8x8xf32, #tpu.memory_space<vmem>>, vector<1x8x8xf32>,
    %c1_99 = arith.constant 1 : index
    %c0_100 = arith.constant 0 : index
    %c0_101 = arith.constant 0 : index
    %138 = vector.load %arg9[%c1_99, %c0_100, %c0_101] : memref<3x8x8xf32, #tpu.memory_space<vmem>>, vector<1x8x8xf32>
    %139 = vector.shape_cast %138 : vector<1x8x8xf32> to vector<8x8xf32>
    %140 = vector.extract_strided_slice %128 {offsets = [1, 0], sizes = [1, 8], strides = [1, 1]} : vector<3x8xf32> to vector<1x8xf32>
    %141 = vector.broadcast %140 : vector<1x8xf32> to vector<8x8xf32>
    %142 = arith.mulf %126, %141 : vector<8x8xf32>
    %143 = arith.addf %139, %142 : vector<8x8xf32>
    %c1_102 = arith.constant 1 : index
    %c0_103 = arith.constant 0 : index
    %c0_104 = arith.constant 0 : index
    %144 = vector.load %arg9[%c1_102, %c0_103, %c0_104] : memref<3x8x8xf32, #tpu.memory_space<vmem>>, vector<1x8x8xf32>
    %145 = vector.shape_cast %144 : vector<1x8x8xf32> to vector<8x8xf32>
    %146 = vector.shape_cast %143 : vector<8x8xf32> to vector<1x8x8xf32>
    tpu.vector_store %arg9[%c1_102, %c0_103, %c0_104], %146 {strides = array<i32>} : memref<3x8x8xf32, #tpu.memory_space<vmem>>, vector<1x8x8xf32>,
    %c2_105 = arith.constant 2 : index
    %c0_106 = arith.constant 0 : index
    %c0_107 = arith.constant 0 : index
    %147 = vector.load %arg9[%c2_105, %c0_106, %c0_107] : memref<3x8x8xf32, #tpu.memory_space<vmem>>, vector<1x8x8xf32>
    %148 = vector.shape_cast %147 : vector<1x8x8xf32> to vector<8x8xf32>
    %149 = vector.extract_strided_slice %128 {offsets = [2, 0], sizes = [1, 8], strides = [1, 1]} : vector<3x8xf32> to vector<1x8xf32>
    %150 = vector.broadcast %149 : vector<1x8xf32> to vector<8x8xf32>
    %151 = arith.mulf %126, %150 : vector<8x8xf32>
    %152 = arith.addf %148, %151 : vector<8x8xf32>
    %c2_108 = arith.constant 2 : index
    %c0_109 = arith.constant 0 : index
    %c0_110 = arith.constant 0 : index
    %153 = vector.load %arg9[%c2_108, %c0_109, %c0_110] : memref<3x8x8xf32, #tpu.memory_space<vmem>>, vector<1x8x8xf32>
    %154 = vector.shape_cast %153 : vector<1x8x8xf32> to vector<8x8xf32>
    %155 = vector.shape_cast %152 : vector<8x8xf32> to vector<1x8x8xf32>
    tpu.vector_store %arg9[%c2_108, %c0_109, %c0_110], %155 {strides = array<i32>} : memref<3x8x8xf32, #tpu.memory_space<vmem>>, vector<1x8x8xf32>,
    %c0_111 = arith.constant 0 : index
    %c3 = arith.constant 3 : index
    %c0_112 = arith.constant 0 : index
    %c0_113 = arith.constant 0 : index
    %156 = vector.load %arg3[%c0_111, %c3, %c0_112, %c0_113] : memref<1x4x8x8xf32, #tpu.memory_space<vmem>>, vector<1x1x8x8xf32>
    %157 = vector.shape_cast %156 : vector<1x1x8x8xf32> to vector<8x8xf32>
    %c0_114 = arith.constant 0 : index
    %c3_115 = arith.constant 3 : index
    %c0_116 = arith.constant 0 : index
    %c0_117 = arith.constant 0 : index
    %158 = vector.load %arg4[%c0_114, %c3_115, %c0_116, %c0_117] : memref<1x4x8x8xf32, #tpu.memory_space<vmem>>, vector<1x1x8x8xf32>
    %159 = vector.shape_cast %158 : vector<1x1x8x8xf32> to vector<8x8xf32>
    %cst_118 = arith.constant dense<0.000000e+00> : vector<8x8xf32>
    %160 = tpu.matmul %157, %159, %cst_118 {dimension_numbers = #tpu.dot_dimension_numbers<[1], [1], [0], [0], [0, 0, 1, 0], [], []>} : vector<8x8xf32>, vector<8x8xf32>, vector<8x8xf32> -> vector<8x8xf32>
    %c0_119 = arith.constant 0 : index
    %c3_120 = arith.constant 3 : index
    %c0_121 = arith.constant 0 : index
    %c0_122 = arith.constant 0 : index
    %161 = vector.load %arg5[%c0_119, %c3_120, %c0_121, %c0_122] : memref<1x4x8x8xf32, #tpu.memory_space<vmem>>, vector<1x1x8x8xf32>
    %162 = vector.shape_cast %161 : vector<1x1x8x8xf32> to vector<8x8xf32>
    %163 = arith.addf %160, %162 : vector<8x8xf32>
    %cst_123 = arith.constant dense<0xFF800000> : vector<8xf32>
    %164 = vector.multi_reduction <maximumf>, %163, %cst_123 [1] : vector<8x8xf32> to vector<8xf32>
    %165 = vector.shape_cast %164 : vector<8xf32> to vector<8x1xf32>
    %166 = vector.broadcast %165 : vector<8x1xf32> to vector<8x8xf32>
    %167 = arith.subf %163, %166 : vector<8x8xf32>
    %168 = math.exp %167 : vector<8x8xf32>
    %cst_124 = arith.constant dense<0.000000e+00> : vector<8xf32>
    %169 = vector.multi_reduction <add>, %168, %cst_124 [1] : vector<8x8xf32> to vector<8xf32>
    %170 = vector.shape_cast %169 : vector<8xf32> to vector<8x1xf32>
    %171 = tpu.reciprocal %170 {approx = true} : vector<8x1xf32> -> vector<8x1xf32>
    %172 = arith.mulf %170, %171 : vector<8x1xf32>
    %cst_125 = arith.constant 2.000000e+00 : f32
    %173 = vector.broadcast %cst_125 : f32 to vector<8x1xf32>
    %174 = arith.subf %173, %172 : vector<8x1xf32>
    %175 = arith.mulf %171, %174 : vector<8x1xf32>
    %176 = vector.broadcast %175 : vector<8x1xf32> to vector<8x8xf32>
    %177 = arith.mulf %168, %176 : vector<8x8xf32>
    %c0_126 = arith.constant 0 : index
    %c3_127 = arith.constant 3 : index
    %c0_128 = arith.constant 0 : index
    %c0_129 = arith.constant 0 : index
    %178 = vector.load %arg6[%c0_126, %c3_127, %c0_128, %c0_129] : memref<1x4x3x8xf32, #tpu.memory_space<vmem>>, vector<1x1x3x8xf32>
    %179 = vector.shape_cast %178 : vector<1x1x3x8xf32> to vector<3x8xf32>
    %c0_130 = arith.constant 0 : index
    %c0_131 = arith.constant 0 : index
    %c0_132 = arith.constant 0 : index
    %180 = vector.load %arg9[%c0_130, %c0_131, %c0_132] : memref<3x8x8xf32, #tpu.memory_space<vmem>>, vector<1x8x8xf32>
    %181 = vector.shape_cast %180 : vector<1x8x8xf32> to vector<8x8xf32>
    %182 = vector.extract_strided_slice %179 {offsets = [0, 0], sizes = [1, 8], strides = [1, 1]} : vector<3x8xf32> to vector<1x8xf32>
    %183 = vector.broadcast %182 : vector<1x8xf32> to vector<8x8xf32>
    %184 = arith.mulf %177, %183 : vector<8x8xf32>
    %185 = arith.addf %181, %184 : vector<8x8xf32>
    %c0_133 = arith.constant 0 : index
    %c0_134 = arith.constant 0 : index
    %c0_135 = arith.constant 0 : index
    %186 = vector.load %arg9[%c0_133, %c0_134, %c0_135] : memref<3x8x8xf32, #tpu.memory_space<vmem>>, vector<1x8x8xf32>
    %187 = vector.shape_cast %186 : vector<1x8x8xf32> to vector<8x8xf32>
    %188 = vector.shape_cast %185 : vector<8x8xf32> to vector<1x8x8xf32>
    tpu.vector_store %arg9[%c0_133, %c0_134, %c0_135], %188 {strides = array<i32>} : memref<3x8x8xf32, #tpu.memory_space<vmem>>, vector<1x8x8xf32>,
    %c1_136 = arith.constant 1 : index
    %c0_137 = arith.constant 0 : index
    %c0_138 = arith.constant 0 : index
    %189 = vector.load %arg9[%c1_136, %c0_137, %c0_138] : memref<3x8x8xf32, #tpu.memory_space<vmem>>, vector<1x8x8xf32>
    %190 = vector.shape_cast %189 : vector<1x8x8xf32> to vector<8x8xf32>
    %191 = vector.extract_strided_slice %179 {offsets = [1, 0], sizes = [1, 8], strides = [1, 1]} : vector<3x8xf32> to vector<1x8xf32>
    %192 = vector.broadcast %191 : vector<1x8xf32> to vector<8x8xf32>
    %193 = arith.mulf %177, %192 : vector<8x8xf32>
    %194 = arith.addf %190, %193 : vector<8x8xf32>
    %c1_139 = arith.constant 1 : index
    %c0_140 = arith.constant 0 : index
    %c0_141 = arith.constant 0 : index
    %195 = vector.load %arg9[%c1_139, %c0_140, %c0_141] : memref<3x8x8xf32, #tpu.memory_space<vmem>>, vector<1x8x8xf32>
    %196 = vector.shape_cast %195 : vector<1x8x8xf32> to vector<8x8xf32>
    %197 = vector.shape_cast %194 : vector<8x8xf32> to vector<1x8x8xf32>
    tpu.vector_store %arg9[%c1_139, %c0_140, %c0_141], %197 {strides = array<i32>} : memref<3x8x8xf32, #tpu.memory_space<vmem>>, vector<1x8x8xf32>,
    %c2_142 = arith.constant 2 : index
    %c0_143 = arith.constant 0 : index
    %c0_144 = arith.constant 0 : index
    %198 = vector.load %arg9[%c2_142, %c0_143, %c0_144] : memref<3x8x8xf32, #tpu.memory_space<vmem>>, vector<1x8x8xf32>
    %199 = vector.shape_cast %198 : vector<1x8x8xf32> to vector<8x8xf32>
    %200 = vector.extract_strided_slice %179 {offsets = [2, 0], sizes = [1, 8], strides = [1, 1]} : vector<3x8xf32> to vector<1x8xf32>
    %201 = vector.broadcast %200 : vector<1x8xf32> to vector<8x8xf32>
    %202 = arith.mulf %177, %201 : vector<8x8xf32>
    %203 = arith.addf %199, %202 : vector<8x8xf32>
    %c2_145 = arith.constant 2 : index
    %c0_146 = arith.constant 0 : index
    %c0_147 = arith.constant 0 : index
    %204 = vector.load %arg9[%c2_145, %c0_146, %c0_147] : memref<3x8x8xf32, #tpu.memory_space<vmem>>, vector<1x8x8xf32>
    %205 = vector.shape_cast %204 : vector<1x8x8xf32> to vector<8x8xf32>
    %206 = vector.shape_cast %203 : vector<8x8xf32> to vector<1x8x8xf32>
    tpu.vector_store %arg9[%c2_145, %c0_146, %c0_147], %206 {strides = array<i32>} : memref<3x8x8xf32, #tpu.memory_space<vmem>>, vector<1x8x8xf32>,
    %c0_i32_148 = arith.constant 0 : i32
    %207 = arith.cmpi eq, %arg2, %c0_i32_148 : i32
    %208 = arith.extui %207 : i1 to i32
    %c0_i32_149 = arith.constant 0 : i32
    %209 = arith.cmpi ne, %208, %c0_i32_149 : i32
    scf.if %209 {
      %c0_150 = arith.constant 0 : index
      %c0_151 = arith.constant 0 : index
      %c0_152 = arith.constant 0 : index
      %c0_153 = arith.constant 0 : index
      %210 = vector.load %arg7[%c0_150, %c0_151, %c0_152, %c0_153] : memref<1x3x8x8xf32, #tpu.memory_space<vmem>>, vector<1x3x8x8xf32>
      %211 = vector.shape_cast %210 : vector<1x3x8x8xf32> to vector<3x8x8xf32>
      %c0_154 = arith.constant 0 : index
      %c0_155 = arith.constant 0 : index
      %c0_156 = arith.constant 0 : index
      %212 = vector.load %arg9[%c0_154, %c0_155, %c0_156] : memref<3x8x8xf32, #tpu.memory_space<vmem>>, vector<3x8x8xf32>
      %213 = arith.mulf %212, %211 : vector<3x8x8xf32>
      %cst_157 = arith.constant dense<0.000000e+00> : vector<3x8xf32>
      %214 = vector.multi_reduction <add>, %213, %cst_157 [2] : vector<3x8x8xf32> to vector<3x8xf32>
      %c0_158 = arith.constant 0 : index
      %c0_159 = arith.constant 0 : index
      %c0_160 = arith.constant 0 : index
      %215 = vector.load %arg8[%c0_158, %c0_159, %c0_160] : memref<1x3x8xf32, #tpu.memory_space<vmem>>, vector<1x3x8xf32>
      %216 = vector.shape_cast %215 : vector<1x3x8xf32> to vector<3x8xf32>
      %217 = vector.shape_cast %214 : vector<3x8xf32> to vector<1x3x8xf32>
      tpu.vector_store %arg8[%c0_158, %c0_159, %c0_160], %217 {strides = array<i32>} : memref<1x3x8xf32, #tpu.memory_space<vmem>>, vector<1x3x8xf32>,
    } else {
    }
    return
  }
  func.func @transform_0(%arg0: i32, %arg1: i32, %arg2: i32) -> (i32, i32, i32, i32) {
    %c0_i32 = arith.constant 0 : i32
    %c0_i32_0 = arith.constant 0 : i32
    return %arg0, %arg2, %arg1, %c0_i32 : i32, i32, i32, i32
  }
  func.func @transform_1(%arg0: i32, %arg1: i32, %arg2: i32) -> (i32, i32, i32, i32) {
    %c0_i32 = arith.constant 0 : i32
    %c0_i32_0 = arith.constant 0 : i32
    %c0_i32_1 = arith.constant 0 : i32
    return %arg0, %arg2, %c0_i32, %c0_i32_0 : i32, i32, i32, i32
  }
  func.func @transform_2(%arg0: i32, %arg1: i32, %arg2: i32) -> (i32, i32, i32, i32) {
    %c0_i32 = arith.constant 0 : i32
    %c0_i32_0 = arith.constant 0 : i32
    return %arg0, %arg2, %arg1, %c0_i32 : i32, i32, i32, i32
  }
  func.func @transform_3(%arg0: i32, %arg1: i32, %arg2: i32) -> (i32, i32, i32, i32) {
    %c0_i32 = arith.constant 0 : i32
    %c0_i32_0 = arith.constant 0 : i32
    %c0_i32_1 = arith.constant 0 : i32
    return %arg0, %arg2, %c0_i32, %c0_i32_0 : i32, i32, i32, i32
  }
  func.func @transform_4(%arg0: i32, %arg1: i32, %arg2: i32) -> (i32, i32, i32, i32) {
    %c0_i32 = arith.constant 0 : i32
    %c0_i32_0 = arith.constant 0 : i32
    %c0_i32_1 = arith.constant 0 : i32
    return %arg0, %c0_i32, %arg1, %c0_i32_0 : i32, i32, i32, i32
  }
  func.func @transform_5(%arg0: i32, %arg1: i32, %arg2: i32) -> (i32, i32, i32) {
    %c0_i32 = arith.constant 0 : i32
    %c0_i32_0 = arith.constant 0 : i32
    return %arg0, %c0_i32, %arg1 : i32, i32, i32
  }
}

</mosaic_0001>

<bundles_post_ra>
// kernel: tpu_custom_call.1
= control target key start
LH: loop header
LB: loop body
LE: loop exit
PB: predicated region body
PF: predicated region fallthrough
CT: control target
= control target key end

     0   :  { %s1815_s0 = inlined_call_operand.hbm [shape: f32[2,4,8,8], index: 0, kind: input, shape index: {}]   ;;  %s1816_s1 = inlined_call_operand.hbm [shape: f32[2,4,8,8], index: 1, kind: input, shape index: {}]   ;;  %s1817_s2 = inlined_call_operand.hbm [shape: f32[2,4,8,8], index: 2, kind: input, shape index: {}]   ;;  %s1818_s3 = inlined_call_operand.vmem [shape: f32[2,4,3,8], index: 3, kind: input, shape index: {}]   ;;  %s1819_s4 = inlined_call_operand.vmem [shape: f32[2,3,8,8], index: 4, kind: input, shape index: {}]   ;;  %s1820_s5 = inlined_call_operand.vmem [shape: f32[2,3,8], index: 5, kind: output, shape index: {}]  }
   0x1   :  { %1827 = sst [smem:[#allocation10_spill]] %s1815_s0 }
   0x2   :  { %10 = vsyncpa [#allocation4], 0 }
   0x3   :  { %12 = vsyncpa [#allocation4 + $0x1], 0 }
   0x4   :  { %13 = vsyncpa [#allocation6], 0 }
   0x5   :  { %15 = vsyncpa [#allocation6 + $0x1], 0  ;;  %s1495_s18 = smov 0   ;;  %s1497_s19 = smov 0  }
   0x6   :  { %s1499_s20 = smov 0   ;;  %s1501_s21 = smov 0  }
   0x7   :  { %s1503_s22 = smov 0   ;;  %s1505_s23 = smov 0  }
   0x8 LB: > { %s1822_s24 = sadd.s32 4294967295, %s1456_s23   ;;  %s40_s25 = sadd.s32 1, %s1452_s22  ;;  %s1456_s23 = sphi %s1505_s23, %s21_s23   ;;  %s1452_s22 = sphi %s1503_s22, %s1843_s22   ;;  %s1448_s21 = sphi %s1501_s21, %s1842_s21   ;;  %s1444_s20 = sphi %s1499_s20, %s1841_s20   ;;  %s1440_s19 = sphi %s1497_s19, %s1840_s19   ;;  %s1436_s18 = sphi %s1495_s18, %s1839_s18  }
   0x9   : > { %p42_p0 = scmp.ge.s32.totalorder %s40_s25, 2  ;;  %s51_s26 = sadd.s32 1, %s1444_s20 }
   0xa   : > { %p58_p1 = scmp.ne.s32.totalorder %s1444_s20, %s1440_s19  ;;  %p59_p2 = scmp.eq.s32.totalorder %s1456_s23, 0 }
   0xb   : > { %s1845_s25 = smov (%p42_p0, %s40_s25), 0  ;;  %p64_p4 = scmp.ne.s32.totalorder %s1440_s19, %s1436_s18 }
   0xc   : > { %p60_p3 = por %p59_p2, %p58_p1  ;;  %s44_s27 = ssub.s32 %s1452_s22, %s1845_s25 }
   0xd   : > { %p65_p5 = scmp.eq.s32.totalorder %s1822_s24, 0  ;;  %p49_p6 = scmp.eq.s32.totalorder %s44_s27, 0 }
   0xe   : > { %p1243_p8 = scmp.lt.s32.totalorder %s1456_s23, 2  ;;  %s230_s30 = sand.u32 1, %s1444_s20  }
   0xf   : > { %p1536_p7 = por %p65_p5, %p64_p4  ;;  %s1546_s6 = sshll.u32 %s1452_s22, 9 }
  0x10   : > { %s1542_s29 = scalar_select %p49_p6, %s1444_s20, %s51_s26  }
  0x11   : > { %s1828_s28 = scalar_select %p1536_p7, 1, 0 }
  0x12   : > { %s1550_s7 = sshll.u32 %s230_s30, 5  ;;  %p1552_p9 = pnand %p1243_p8, %p60_p3 }
  0x13   : > { %s254_s9 = sand.u32 1, %s1456_s23   ;;  %s1561_s12 = scalar_lea.hbm %s1816_s1, %s1546_s6 }
  0x14   : > { %s258_s13 = scalar_lea.vmem [#allocation5], %s1550_s7  ;;  %s1567_s15 = scalar_lea.sflag [#allocation6], %s254_s9 }
  0x15   : > { %s267_s14 = sshll.u32 %s258_s13, 4  ;;  %s1312_s16 = scalar_lea.hbm %s1561_s12, 512  ;;  %s1564_s14 = int_to_ptr.vmem [resolvable:$true] %s267_s14 }
  0x16   : > { %p1313_p11 = scmp.ne.s32.totalorder %s1561_s12, %s1312_s16  ;;  %p1573_p12 = pneg %p1552_p9 }
  0x17   : > { %s1317_s27 = scalar_lea.hbm %s1816_s1, 1024  ;;  %p1318_p1 = scmp.lt.u32.totalorder %s1561_s12, %s1816_s1 }
  0x18   : > { %p1315_p13 = pnand %p1573_p12, %p1313_p11  ;;  %p1319_p2 = scmp.lt.u32.totalorder %s1317_s27, %s1312_s16 }
  0x19   : > { %p1321_p4 = scmp.lt.u32.totalorder %s1312_s16, %s1561_s12 }
  0x1a   : > { %p1316_p0 = pneg %p1315_p13  ;;  %p1320_p3 = por %p1319_p2, %p1318_p1 }
  0x1c   : > { %p1322_p5 = por %p1321_p4, %p1320_p3 }
  0x1e   : > { %p1323_p6 = pnand %p1322_p5, %p1316_p0 }
  0x20   : > { %1326 = shalt.err (!%p1323_p6)
}
  0x21   : > { %s1327_s9 = scalar_lea.vmem %s1564_s14, 512  ;;  %s1458_s13 = smov [#allocation5]  }
  0x22   : > { %p1328_p8 = scmp.ne.s32.totalorder %s1564_s14, %s1327_s9  ;;  %s1332_s18 = sshll.u32 %s1458_s13, 4  ;;  %s1333_s18 = int_to_ptr.vmem [resolvable:$false] %s1332_s18 }
  0x23   : > { %s1334_s26 = scalar_lea.vmem %s1333_s18, 1024  ;;  %p1335_p10 = scmp.lt.s32.totalorder %s1564_s14, %s1333_s18 }
  0x24   : > { %p1330_p11 = pnand %p1328_p8, %p1573_p12  ;;  %p1336_p7 = scmp.lt.s32.totalorder %s1334_s26, %s1327_s9 }
  0x26   : > { %p1331_p13 = pneg %p1330_p11  ;;  %p1337_p1 = por %p1336_p7, %p1335_p10 }
  0x28   : > { %p1338_p2 = pnand %p1337_p1, %p1331_p13 }
  0x2a   : > { %1341 = shalt.err (!%p1338_p2)
}
  0x2b   : > { %s1823_s16 = smov 128   ;;  %s1825_s27 = smov 8  }
  0x2c   : > { %1239 = dma.hbm_to_vmem [thread:$0]  (!%p1552_p9), %s1561_s12, 512, %s1564_s14, %s1567_s15, %s1823_s16, %s1823_s16, %s1825_s27  }
  0x2d   : > { %p323_p7 = scmp.lt.s32.totalorder %s1456_s23, 3  ;;  %p1831_p10 = scmp.ge.s32.totalorder %s1456_s23, 1 }
  0x2e   : > { %s1833_s0 = sld [smem:[#allocation10_spill]]  ;;  %s234_s18 = scalar_lea.vmem [#allocation3], %s1550_s7 }
  0x2f   : > { %p1603_p0 = pnand %p1831_p10, %p323_p7  ;;  %s244_s26 = sshll.u32 %s234_s18, 4  ;;  %s1614_s26 = int_to_ptr.vmem [resolvable:$true] %s244_s26 }
  0x30   : > { %s1618_s12 = scalar_lea.sflag [#allocation4], %s230_s30 }
  0x31   : > { %s1832_s10 = scalar_select %p1603_p0, 1, 0 }
  0x34   : > { %s1611_s13 = scalar_lea.hbm %s1833_s0, %s1546_s6  ;;  %s1347_s9 = scalar_lea.hbm %s1833_s0, 1024 }
  0x35   : > { %s1342_s14 = scalar_lea.hbm %s1611_s13, 512  ;;  %p1348_p6 = scmp.lt.u32.totalorder %s1611_s13, %s1833_s0 }
  0x36   : > { %p1343_p3 = scmp.ne.s32.totalorder %s1611_s13, %s1342_s14  ;;  %p1349_p8 = scmp.lt.u32.totalorder %s1347_s9, %s1342_s14 }
  0x37   : > { %p1351_p13 = scmp.lt.u32.totalorder %s1342_s14, %s1611_s13 }
  0x38   : > { %p1345_p4 = pnand %p1343_p3, %p1573_p12  ;;  %p1350_p11 = por %p1349_p8, %p1348_p6 }
  0x3a   : > { %p1346_p5 = pneg %p1345_p4  ;;  %p1352_p1 = por %p1351_p13, %p1350_p11 }
  0x3c   : > { %p1353_p2 = pnand %p1352_p1, %p1346_p5 }
  0x3e   : > { %1356 = shalt.err (!%p1353_p2)
}
  0x3f   : > { %s1357_s30 = scalar_lea.vmem %s1614_s26, 512  ;;  %s1461_s24 = smov [#allocation3]  }
  0x40   : > { %p1358_p7 = scmp.ne.s32.totalorder %s1614_s26, %s1357_s30  ;;  %s1362_s18 = sshll.u32 %s1461_s24, 4  ;;  %s1363_s18 = int_to_ptr.vmem [resolvable:$false] %s1362_s18 }
  0x41   : > { %s1364_s16 = scalar_lea.vmem %s1363_s18, 1024  ;;  %p1365_p4 = scmp.lt.s32.totalorder %s1614_s26, %s1363_s18 }
  0x42   : > { %p1360_p10 = pnand %p1358_p7, %p1573_p12  ;;  %p1366_p0 = scmp.lt.s32.totalorder %s1364_s16, %s1357_s30 }
  0x44   : > { %p1361_p3 = pneg %p1360_p10  ;;  %p1367_p6 = por %p1366_p0, %p1365_p4 }
  0x46   : > { %p1368_p8 = pnand %p1367_p6, %p1361_p3 }
  0x48   : > { %1371 = shalt.err (!%p1368_p8)
}
  0x49   : > { %s1834_s27 = smov 8   ;;  %s1835_s14 = smov 128  }
  0x4a   : > { %1236 = dma.hbm_to_vmem [thread:$0]  (!%p1552_p9), %s1611_s13, 512, %s1614_s26, %s1618_s12, %s1835_s14, %s1835_s14, %s1834_s27  }
  0x4b   : > { %s1649_s24 = scalar_lea.hbm %s1817_s2, %s1546_s6  ;;  %s281_s30 = scalar_lea.vmem [#allocation7], %s1550_s7 }
  0x4c   : > { %s291_s18 = sshll.u32 %s281_s30, 4  ;;  %s1372_s16 = scalar_lea.hbm %s1649_s24, 512  ;;  %s1652_s18 = int_to_ptr.vmem [resolvable:$true] %s291_s18 }
  0x4d   : > { %p1373_p0 = scmp.ne.s32.totalorder %s1649_s24, %s1372_s16  ;;  %s1377_s26 = scalar_lea.hbm %s1817_s2, 1024 }
  0x4e   : > { %p1378_p13 = scmp.lt.u32.totalorder %s1649_s24, %s1817_s2  ;;  %p1379_p1 = scmp.lt.u32.totalorder %s1377_s26, %s1372_s16 }
  0x4f   : > { %p1375_p5 = pnand %p1373_p0, %p1573_p12  ;;  %p1381_p7 = scmp.lt.u32.totalorder %s1372_s16, %s1649_s24 }
  0x50   : > { %p1380_p2 = por %p1379_p1, %p1378_p13 }
  0x51   : > { %p1376_p11 = pneg %p1375_p5 }
  0x52   : > { %p1382_p10 = por %p1381_p7, %p1380_p2 }
  0x54   : > { %p1383_p3 = pnand %p1382_p10, %p1376_p11 }
  0x56   : > { %1386 = shalt.err (!%p1383_p3)
}
  0x57   : > { %s1387_s7 = scalar_lea.vmem %s1652_s18, 512  ;;  %s1462_s0 = smov [#allocation7]  }
  0x58   : > { %p1388_p4 = scmp.ne.s32.totalorder %s1652_s18, %s1387_s7  ;;  %s1392_s11 = sshll.u32 %s1462_s0, 4  ;;  %s1393_s11 = int_to_ptr.vmem [resolvable:$false] %s1392_s11 }
  0x59   : > { %s1394_s9 = scalar_lea.vmem %s1393_s11, 1024  ;;  %p1395_p0 = scmp.lt.s32.totalorder %s1652_s18, %s1393_s11 }
  0x5a   : > { %p1390_p6 = pnand %p1388_p4, %p1573_p12  ;;  %p1396_p5 = scmp.lt.s32.totalorder %s1394_s9, %s1387_s7 }
  0x5c   : > { %p1391_p8 = pneg %p1390_p6  ;;  %p1397_p13 = por %p1396_p5, %p1395_p0 }
  0x5e   : > { %p1398_p1 = pnand %p1397_p13, %p1391_p8 }
  0x60   : > { %1401 = shalt.err (!%p1398_p1)
}
  0x61   : > { %1242 = dma.hbm_to_vmem [thread:$0]  (!%p1552_p9), %s1649_s24, 512, %s1652_s18, %s1567_s15, %s1835_s14, %s1835_s14, %s1834_s27  }
  0x62   : > { %p1836_p12 = scmp.ne.s32.totalorder %s1832_s10, 0 }
  0x63   : > { %s329_s17 = sand.u32 (!%p1836_p12), 1, %s1440_s19   ;;  %p1837_p11 = scmp.ne.s32.totalorder (!%p1836_p12), %s1828_s28, 0 }
  0x64   : > { %327 = sbr.rel (%p1836_p12) target bundleno = 847 (0x34f), region = 40  ;;  %s1682_s30 = sshll.u32 (!%p1836_p12), %s329_s17, 5 }
  0x65   : > { %s330_s16 = scalar_lea.sflag (!%p1836_p12), [#allocation4], %s329_s17  ;;  %s1685_s13 = scalar_lea.vmem (!%p1836_p12), [#allocation3], %s1682_s30 }
  0x6b   : > { %1427 = dma.done.wait (%p1837_p11), %s330_s16, 512  }
  0x6c   : > { %1429 = vsyncadd (%p1837_p11), %s330_s16, 4294966784  ;;  %s1838_s8 = sadd.s32 4294967295, %s1456_s23   ;;  %s342_s27 = scalar_lea.vmem [#allocation5], %s1682_s30 }
  0x6d   : > { %s338_s15 = sand.u32 1, %s1838_s8  }
  0x6e   : > { %s339_s10 = scalar_lea.sflag [#allocation6], %s338_s15 }
  0x6f   : > { %1431 = dma.done.wait (%p1837_p11), %s339_s10, 1024  }
  0x70   : > { %1433 = vsyncadd (%p1837_p11), %s339_s10, 4294966272  ;;  %vm439_vm0 = vcmask 64512   ;;  %v1463_v0 = vmov 0.0   ;;  %vm1464_vm1 = vmmov 0   ;;  %v444_v1 = vld [vmem:[%s342_s27] sm:$0xff]  ;;  %v1175_v2 = vld [vmem:[%s342_s27 + $0x8] sm:$0xff]  ;;  %v539_v50 = vlaneseq }
  0x71   : > { %1206 = vmatprep.subr.mxu0 %v1463_v0  ;;  %440 = vst.msk [vmem:[#allocation2] sm:$0xff] %vm439_vm0, %v1463_v0  ;;  %441 = vst.msk [vmem:[#allocation2 + $0x8] sm:$0xff] %vm439_vm0, %v1463_v0  ;;  %1208 = vmatprep.mubr.msk.f32.mxu0 %vm1464_vm1, %v1463_v0  ;;  %v443_v3 = vld [vmem:[%s1685_s13] sm:$0xff]  ;;  %v1174_v4 = vld [vmem:[%s1685_s13 + $0x8] sm:$0xff]  ;;  %s351_s28 = scalar_lea.vmem [#allocation7], %s1682_s30  ;;  %p411_p9 = scmp.lt.s32.totalorder %s1448_s21, 1 }
  0x72   : > { %442 = vst.msk [vmem:[#allocation2 + $0x10] sm:$0xff] %vm439_vm0, %v1463_v0  ;;  %1211 = vmatprep.subr.mxu1 %v1463_v0  ;;  %1213 = vmatprep.mubr.msk.f32.mxu1 %vm1464_vm1, %v1463_v0  ;;  %v1181_v5 = vld [vmem:[%s342_s27 + $0x10] sm:$0xff]  ;;  %v1187_v6 = vld [vmem:[%s342_s27 + $0x18] sm:$0xff]  ;;  %v445_v9 = vld [vmem:[%s351_s28] sm:$0xff]  ;;  %v1738_v52 = vshrl.u32 %v539_v50, 7  ;;  %vm968_vm2 = vcmask 1041409  }
  0x73   : > { %1207 = vmatpush3.xpose.msk.msra.mxu0 %vm439_vm0, %v444_v1  ;;  %1212 = vmatpush3.xpose.msk.msra.mxu1 %vm439_vm0, %v1175_v2  ;;  %v1180_v7 = vld [vmem:[%s1685_s13 + $0x10] sm:$0xff]  ;;  %v1186_v8 = vld [vmem:[%s1685_s13 + $0x18] sm:$0xff]  ;;  %v1176_v10 = vld [vmem:[%s351_s28 + $0x8] sm:$0xff]  ;;  %s1847_s21 = smov (!%p411_p9, %s1448_s21), 1  ;;  %vm970_vm3 = vcmask 1042434   ;;  %vm973_vm4 = vcmask 59392  }
  0x74   : > { %1216 = vmatprep.subr.mxu0 %v1463_v0  ;;  %1221 = vmatprep.subr.mxu1 %v1463_v0  ;;  %v1182_v17 = vld [vmem:[%s351_s28 + $0x10] sm:$0xff]  ;;  %v1188_v19 = vld [vmem:[%s351_s28 + $0x18] sm:$0xff]  ;;  %s1197_s14 = sshll.u32 %s1847_s21, 4  ;;  %v1746_v55 = vsub.s32 0, %v1738_v52  ;;  %v1750_v57 = vsub.s32 1, %v1738_v52  ;;  %v1753_v58 = vsub.s32 2, %v1738_v52 }
  0x75   : > { %s1743_s26 = scalar_lea.vmem %s1818_s3, %s1197_s14  ;;  %s1226_s12 = smul.u32 24, %s1847_s21 }
  0x76   : > { %1209 = vmatmul.mubr.msk.f32.vlgmr.msra.gmra.mrb[0].mxu0 %vm439_vm0, %v443_v3  ;;  %1214 = vmatmul.mubr.msk.f32.vlgmr.msra.gmra.mrb[0].mxu1 %vm439_vm0, %v1174_v4  ;;  %v537_v56 = vld [vmem:[%s1743_s26] sm:$0x7]  ;;  %s1171_s11 = sshll.u32 %s1847_s21, 2 }
  0x77   : > { %1217 = vmatpush3.xpose.msk.msra.mxu0 %vm439_vm0, %v1181_v5  ;;  %1218 = vmatprep.mubr.msk.f32.mxu0 %vm1464_vm1, %v1463_v0  ;;  %v542_v62 = vrot.slane %v537_v56, %v1746_v55  ;;  %v551_v63 = vrot.slane %v537_v56, %v1750_v57  ;;  %s427_s0 = scalar_lea.vmem %s1819_s4, %s1226_s12  ;;  %s434_s30 = scalar_lea.vmem %s1820_s5, %s1171_s11 }
  0x78   : > { %1222 = vmatpush3.xpose.msk.msra.mxu1 %vm439_vm0, %v1187_v6  ;;  %1223 = vmatprep.mubr.msk.f32.mxu1 %vm1464_vm1, %v1463_v0  ;;  %v560_v0 = vrot.slane %v537_v56, %v1753_v58  ;;  %v538_v6 = vld [vmem:[#allocation2] sm:$0xff] }
  0x7a   : > { %1219 = vmatmul.mubr.msk.f32.vlgmr.msra.gmra.mrb[2].mxu0 %vm439_vm0, %v1180_v7  ;;  %v547_v7 = vld [vmem:[#allocation2 + $0x8] sm:$0xff] }
  0x7b   : > { %1224 = vmatmul.mubr.msk.f32.vlgmr.msra.gmra.mrb[2].mxu1 %vm439_vm0, %v1186_v8  ;;  %v556_v8 = vld [vmem:[#allocation2 + $0x10] sm:$0xff] }
 0x149   : > { %v519_v11 = vpop.f32.mrb[0].mxu0  ;;  %v642_v12 = vpop.f32.mrb[0].mxu1 }
 0x14a   : > { %v520_v13 = vadd.f32 %v519_v11, %v445_v9  ;;  %v1210_v14 = vpop.f32.mrb[1].mxu0  ;;  %v643_v15 = vadd.f32 %v1176_v10, %v642_v12  ;;  %v1215_v16 = vpop.f32.mrb[1].mxu1 }
 0x14c   : > { %v523_v18 = vsel %vm439_vm0, %v520_v13, -inf  ;;  %v646_v23 = vsel %vm439_vm0, %v643_v15, -inf }
 0x14d   : > { %524 = vmax.xlane.f32.xlu0 %v523_v18  ;;  %v764_v20 = vpop.f32.mrb[2].mxu0 }
 0x14e   : > { %v765_v21 = vadd.f32 %v1182_v17, %v764_v20  ;;  %v886_v22 = vpop.f32.mrb[2].mxu1  ;;  %v1220_v24 = vpop.f32.mrb[3].mxu0  ;;  %v1179_v17 = vld [vmem:[%s1743_s26 + $0x4] sm:$0x7] }
 0x14f   : > { %v887_v25 = vadd.f32 %v1188_v19, %v886_v22  ;;  %v1225_v26 = vpop.f32.mrb[3].mxu1  ;;  %v666_v19 = vrot.slane %v1179_v17, %v1746_v55  ;;  %v674_v20 = vrot.slane %v1179_v17, %v1750_v57 }
 0x150   : > { %v768_v27 = vsel %vm439_vm0, %v765_v21, -inf }
 0x151   : > { %647 = vmax.xlane.f32.xlu0 %v646_v23  ;;  %769 = vmax.xlane.f32.xlu1 %v768_v27  ;;  %v890_v28 = vsel %vm439_vm0, %v887_v25, -inf }
 0x155   : > { %891 = vmax.xlane.f32.xlu1 %v890_v28 }
 0x1da   : > { %v525_v29 = vpop.xlane.xlu0 %524 }
 0x1db   : > { %v526_v30 = vsub.f32 %v520_v13, %v525_v29 }
 0x1dd   : > { %v527_v31 = vmul.f32 1.442695, %v526_v30 }
 0x1de   : > { %v648_v32 = vpop.xlane.xlu0 %647  ;;  %v770_v33 = vpop.xlane.xlu1 %769 }
 0x1df   : > { %1296 = vpow2.f32 %v527_v31  ;;  %v649_v34 = vsub.f32 %v643_v15, %v648_v32  ;;  %v771_v35 = vsub.f32 %v765_v21, %v770_v33  ;;  %v682_v21 = vrot.slane %v1179_v17, %v1753_v58 }
 0x1e1   : > { %v650_v36 = vmul.f32 1.442695, %v649_v34  ;;  %v772_v37 = vmul.f32 1.442695, %v771_v35  ;;  %v1185_v35 = vld [vmem:[%s1743_s26 + $0x8] sm:$0x7] }
 0x1e2   : > { %v892_v38 = vpop.xlane.xlu1 %891 }
 0x1e3   : > { %1298 = vpow2.f32 %v650_v36  ;;  %v893_v39 = vsub.f32 %v887_v25, %v892_v38  ;;  %v796_v38 = vrot.slane %v1185_v35, %v1750_v57 }
 0x1e4   : > { %1300 = vpow2.f32 %v772_v37  ;;  %v788_v37 = vrot.slane %v1185_v35, %v1746_v55 }
 0x1e5   : > { %v894_v40 = vmul.f32 1.442695, %v893_v39  ;;  %v804_v39 = vrot.slane %v1185_v35, %v1753_v58 }
 0x1e7   : > { %1302 = vpow2.f32 %v894_v40 }
 0x1e9   : > { %v1297_v41 = vpop.eup %1296 }
 0x1ea   : > { %v529_v42 = vsel %vm439_vm0, %v1297_v41, 0.0 }
 0x1eb   : > { %530 = vadd.xlane.f32.xlu0 %v529_v42 }
 0x1ed   : > { %v1299_v43 = vpop.eup %1298 }
 0x1ee   : > { %v1723_v44 = vpop.eup %1300  ;;  %v652_v45 = vsel %vm439_vm0, %v1299_v43, 0.0 }
 0x1ef   : > { %653 = vadd.xlane.f32.xlu1 %v652_v45  ;;  %v774_v46 = vsel %vm439_vm0, %v1723_v44, 0.0 }
 0x1f0   : > { %775 = vadd.xlane.f32.xlu0 %v774_v46 }
 0x1f1   : > { %v1728_v47 = vpop.eup %1302 }
 0x1f2   : > { %v896_v48 = vsel %vm439_vm0, %v1728_v47, 0.0 }
 0x1f3   : > { %897 = vadd.xlane.f32.xlu1 %v896_v48 }
 0x278   : > { %v531_v49 = vpop.xlane.xlu0 %530 }
 0x279   : > { %1304 = vrcp.f32 %v531_v49 }
 0x27c   : > { %v654_v51 = vpop.xlane.xlu1 %653 }
 0x27d   : > { %1306 = vrcp.f32 %v654_v51  ;;  %v776_v53 = vpop.xlane.xlu0 %775 }
 0x27e   : > { %1308 = vrcp.f32 %v776_v53 }
 0x280   : > { %v898_v5 = vpop.xlane.xlu1 %897 }
 0x281   : > { %1310 = vrcp.f32 %v898_v5 }
 0x283   : > { %v1305_v54 = vpop.eup %1304 }
 0x284   : > { %v533_v59 = vmul.f32 %v1305_v54, %v531_v49 }
 0x286   : > { %v534_v60 = vsub.f32 2.0, %v533_v59  ;;  %v1191_v59 = vld [vmem:[%s1743_s26 + $0xc] sm:$0x7] }
 0x287   : > { %v1307_v61 = vpop.eup %1306 }
 0x288   : > { %v535_v1 = vmul.f32 %v1305_v54, %v534_v60  ;;  %v656_v2 = vmul.f32 %v1307_v61, %v654_v51  ;;  %v1309_v12 = vpop.eup %1308  ;;  %v918_v60 = vrot.slane %v1191_v59, %v1750_v57  ;;  %v935_v57 = vld [vmem:[%s427_s0 + $0x10] sm:$0xff] }
 0x289   : > { %v778_v18 = vmul.f32 %v1309_v12, %v776_v53 }
 0x28a   : > { %v536_v3 = vmul.f32 %v1297_v41, %v535_v1  ;;  %v657_v4 = vsub.f32 2.0, %v656_v2 }
 0x28b   : > { %v779_v23 = vsub.f32 2.0, %v778_v18  ;;  %v1311_v27 = vpop.eup %1310 }
 0x28c   : > { %v543_v9 = vmul.f32 %v542_v62, %v536_v3  ;;  %v552_v10 = vmul.f32 %v551_v63, %v536_v3  ;;  %v561_v11 = vmul.f32 %v560_v0, %v536_v3  ;;  %v658_v16 = vmul.f32 %v1307_v61, %v657_v4 }
 0x28d   : > { %v780_v31 = vmul.f32 %v1309_v12, %v779_v23  ;;  %v900_v36 = vmul.f32 %v1311_v27, %v898_v5  ;;  %v926_v61 = vrot.slane %v1191_v59, %v1753_v58 }
 0x28e   : > { %v544_v13 = vadd.f32 %v543_v9, %v538_v6  ;;  %v553_v14 = vadd.f32 %v552_v10, %v547_v7  ;;  %v562_v15 = vadd.f32 %v561_v11, %v556_v8  ;;  %v659_v22 = vmul.f32 %v1299_v43, %v658_v16 }
 0x28f   : > { %v781_v40 = vmul.f32 %v1723_v44, %v780_v31  ;;  %v901_v41 = vsub.f32 2.0, %v900_v36  ;;  %v910_v44 = vrot.slane %v1191_v59, %v1746_v55  ;;  %v933_v55 = vld [vmem:[%s427_s0] sm:$0xff]  ;;  %v955_v16 = vand.u32 127, %v539_v50 }
 0x290   : > { %545 = vst.msk [vmem:[#allocation2] sm:$0xff] %vm439_vm0, %v544_v13  ;;  %554 = vst.msk [vmem:[#allocation2 + $0x8] sm:$0xff] %vm439_vm0, %v553_v14  ;;  %v667_v24 = vmul.f32 %v666_v19, %v659_v22  ;;  %v675_v25 = vmul.f32 %v674_v20, %v659_v22  ;;  %v683_v26 = vmul.f32 %v682_v21, %v659_v22 }
 0x291   : > { %563 = vst.msk [vmem:[#allocation2 + $0x10] sm:$0xff] %vm439_vm0, %v562_v15  ;;  %v789_v42 = vmul.f32 %v788_v37, %v781_v40  ;;  %v797_v43 = vmul.f32 %v796_v38, %v781_v40  ;;  %v805_v45 = vmul.f32 %v804_v39, %v781_v40  ;;  %v902_v56 = vmul.f32 %v1311_v27, %v901_v41 }
 0x292   : > { %v958_v17 = vsub.s32 %v955_v16, %v1738_v52 }
 0x293   : > { %v903_v62 = vmul.f32 %v1728_v47, %v902_v56  ;;  %v934_v47 = vld [vmem:[%s427_s0 + $0x8] sm:$0xff] }
 0x295   : > { %v911_v63 = vmul.f32 %v910_v44, %v903_v62  ;;  %v919_v0 = vmul.f32 %v918_v60, %v903_v62  ;;  %v927_v1 = vmul.f32 %v926_v61, %v903_v62 }
 0x297   : > { %v662_v28 = vld [vmem:[#allocation2] sm:$0xff]  ;;  %v670_v29 = vld [vmem:[#allocation2 + $0x8] sm:$0xff] }
 0x298   : > { %v678_v30 = vld [vmem:[#allocation2 + $0x10] sm:$0xff]  ;;  %v668_v32 = vadd.f32 %v667_v24, %v662_v28  ;;  %v676_v33 = vadd.f32 %v675_v25, %v670_v29 }
 0x299   : > { %v684_v34 = vadd.f32 %v683_v26, %v678_v30 }
 0x29a   : > { %669 = vst.msk [vmem:[#allocation2] sm:$0xff] %vm439_vm0, %v668_v32  ;;  %677 = vst.msk [vmem:[#allocation2 + $0x8] sm:$0xff] %vm439_vm0, %v676_v33 }
 0x29b   : > { %685 = vst.msk [vmem:[#allocation2 + $0x10] sm:$0xff] %vm439_vm0, %v684_v34 }
 0x2a1   : > { %v784_v46 = vld [vmem:[#allocation2] sm:$0xff]  ;;  %v792_v48 = vld [vmem:[#allocation2 + $0x8] sm:$0xff] }
 0x2a2   : > { %v800_v49 = vld [vmem:[#allocation2 + $0x10] sm:$0xff]  ;;  %v790_v51 = vadd.f32 %v789_v42, %v784_v46  ;;  %v798_v53 = vadd.f32 %v797_v43, %v792_v48 }
 0x2a3   : > { %v806_v54 = vadd.f32 %v805_v45, %v800_v49 }
 0x2a4   : > { %791 = vst.msk [vmem:[#allocation2] sm:$0xff] %vm439_vm0, %v790_v51  ;;  %799 = vst.msk [vmem:[#allocation2 + $0x8] sm:$0xff] %vm439_vm0, %v798_v53 }
 0x2a5   : > { %807 = vst.msk [vmem:[#allocation2 + $0x10] sm:$0xff] %vm439_vm0, %v806_v54 }
 0x2ab   : > { %v906_v2 = vld [vmem:[#allocation2] sm:$0xff]  ;;  %v914_v3 = vld [vmem:[#allocation2 + $0x8] sm:$0xff] }
 0x2ac   : > { %v922_v4 = vld [vmem:[#allocation2 + $0x10] sm:$0xff]  ;;  %v912_v5 = vadd.f32 %v911_v63, %v906_v2  ;;  %v920_v6 = vadd.f32 %v919_v0, %v914_v3 }
 0x2ad   : > { %v928_v7 = vadd.f32 %v927_v1, %v922_v4 }
 0x2ae   : > { %913 = vst.msk [vmem:[#allocation2] sm:$0xff] %vm439_vm0, %v912_v5  ;;  %921 = vst.msk [vmem:[#allocation2 + $0x8] sm:$0xff] %vm439_vm0, %v920_v6 }
 0x2af   : > { %929 = vst.msk [vmem:[#allocation2 + $0x10] sm:$0xff] %vm439_vm0, %v928_v7 }
 0x2b5   : > { %v937_v58 = vld [vmem:[#allocation2 + $0x8] sm:$0xff]  ;;  %v936_v8 = vld [vmem:[#allocation2] sm:$0xff] }
 0x2b6   : > { %v938_v9 = vld [vmem:[#allocation2 + $0x10] sm:$0xff]  ;;  %v940_v10 = vmul.f32 %v937_v58, %v934_v47  ;;  %v939_v11 = vmul.f32 %v936_v8, %v933_v55 }
 0x2b7   : > { %v941_v14 = vmul.f32 %v938_v9, %v935_v57 }
 0x2b8   : > { %v945_v12 = vsel %vm439_vm0, %v940_v10, 0.0  ;;  %v942_v13 = vsel %vm439_vm0, %v939_v11, 0.0 }
 0x2b9   : > { %946 = vadd.xlane.f32.xlu1 %v945_v12  ;;  %943 = vadd.xlane.f32.xlu0 %v942_v13  ;;  %v948_v15 = vsel %vm439_vm0, %v941_v14, 0.0 }
 0x2bd   : > { %949 = vadd.xlane.f32.xlu0 %v948_v15 }
 0x346   : > { %v947_v18 = vpop.xlane.xlu1 %946  ;;  %v944_v19 = vpop.xlane.xlu0 %943 }
 0x347   : > { %v963_v20 = vrot.slane %v947_v18, %v958_v17  ;;  %v959_v21 = vrot.slane %v944_v19, %v958_v17 }
 0x349   : > { %v969_v24 = vsel %vm968_vm2, %v963_v20, %v959_v21 }
 0x34a   : > { %v950_v22 = vpop.xlane.xlu0 %949 }
 0x34b   : > { %v967_v23 = vrot.slane %v950_v22, %v958_v17 }
 0x34d   : > { %v971_v25 = vsel %vm970_vm3, %v967_v23, %v969_v24 }
 0x34e   : > { %974 = vst.msk [vmem:[%s434_s30] sm:$0x7] %vm973_vm4, %v971_v25 }
 0x34f PF: > { %s21_s23 = sadd.s32 1, %s1456_s23   ;;  %s1839_s18 = smov %s1440_s19 }
 0x350   : > { %p18_p2 = scmp.ge.s32.totalorder %s21_s23, 4   ;;  %s1840_s19 = smov %s1444_s20 }
 0x351   : > { %s1841_s20 = smov %s1542_s29  ;;  %s1842_s21 = smov %s1452_s22 }
 0x352   : > { %s1843_s22 = smov %s1845_s25  ;;  %20 = sbr.rel (!%p18_p2) target bundleno = 8 (0x8), region = 132 }
 0x359   :  { %1000 = vsyncpa [#allocation4], 1 }
 0x35a   :  { %1002 = vsyncpa [#allocation4 + $0x1], 1 }
 0x35b   :  { %1003 = vsyncpa [#allocation6], 1 }
 0x35c   :  { %1005 = vsyncpa [#allocation6 + $0x1], 1 }

</bundles_post_ra>
